<compile_context>
chip_gen: v5e
topology: v5e:2x2
jax: 0.10.0
libtpu: 0.0.40
codegen_flags: <defaults>
</compile_context>

<pallas_src>
import jax
import jax.numpy as jnp
from jax.experimental import pallas as pl
from jax.experimental.pallas import tpu as pltpu


def _round_up(x, m):
    return ((x + m - 1) // m) * m


def _iou_sum_kernel(preds_ref, gt_ref, min_out, max_out, min_acc, max_acc):
    """Accumulate per-(D0, D1) sums of elementwise min/max over the HW axis."""
    k = pl.program_id(1)

    @pl.when(k == 0)
    def _init():
        min_acc[...] = jnp.zeros_like(min_acc)
        max_acc[...] = jnp.zeros_like(max_acc)

    p = preds_ref[...].astype(jnp.float32)
    # gt may be smaller than preds (e.g. (N, 1, tile)); broadcast on-chip.
    g = jnp.broadcast_to(gt_ref[...].astype(jnp.float32), p.shape)

    # torch.where(preds < gt, preds, gt) == elementwise min
    # torch.where(preds > gt, preds, gt) == elementwise max
    min_acc[...] += jnp.minimum(p, g)
    max_acc[...] += jnp.maximum(p, g)

    @pl.when(k == pl.num_programs(1) - 1)
    def _finalize():
        min_out[...] = min_acc[...].sum(axis=-1)[None]
        max_out[...] = max_acc[...].sum(axis=-1)[None]


_VMEM_WORKING_SET_BUDGET = 16 * 1024 * 1024  # block footprint budget, safe on v5e/v6e/v7x
_VMEM_LIMIT_BYTES = 32 * 1024 * 1024         # <= scoped default on v6e/v7x, raises v5e's 16 MiB
_MAX_TILE_HW = 32768                         # lanes; diminishing returns beyond this


def _iou_sums(p3, g3):
    """p3: (D0, D1, HW); g3: (G0, G1, HW) with G0 in {1, D0}, G1 in {1, D1}.

    Returns (min_sum, max_sum), each (D0, D1) float32.
    """
    d0, d1, hw = p3.shape
    g0, g1, _ = g3.shape

    # Bytes per lane-column of the pipelined working set (sublane-padded rows;
    # 2 inputs x 2 pipeline buffers + 2 f32 accumulators).
    def rows(a, b):
        return a * _round_up(b, 8)

    per_lane = (2 * rows(d0, d1) * p3.dtype.itemsize
                + 2 * rows(g0, g1) * g3.dtype.itemsize
                + 2 * rows(d0, d1) * 4)
    tile_hw = max(128, (_VMEM_WORKING_SET_BUDGET // per_lane) // 128 * 128)
    tile_hw = min(tile_hw, _MAX_TILE_HW, _round_up(hw, 128))

    n_blocks = pl.cdiv(hw, tile_hw)
    n_split = 2 if n_blocks >= 2 else 1        # shard the reduction across v7x's 2 TCs
    blocks_per_split = pl.cdiv(n_blocks, n_split)
    hw_pad = n_split * blocks_per_split * tile_hw
    if hw_pad != hw:
        # Zero padding contributes 0 to both the min-sum and the max-sum.
        pad = ((0, 0), (0, 0), (0, hw_pad - hw))
        p3 = jnp.pad(p3, pad)
        g3 = jnp.pad(g3, pad)

    in_specs = [
        pl.BlockSpec((d0, d1, tile_hw),
                     lambda s, k: (0, 0, s * blocks_per_split + k)),
        pl.BlockSpec((g0, g1, tile_hw),
                     lambda s, k: (0, 0, s * blocks_per_split + k)),
    ]
    out_specs = [
        pl.BlockSpec((1, d0, d1), lambda s, k: (s, 0, 0)),
        pl.BlockSpec((1, d0, d1), lambda s, k: (s, 0, 0)),
    ]
    out_shape = (
        jax.ShapeDtypeStruct((n_split, d0, d1), jnp.float32),
        jax.ShapeDtypeStruct((n_split, d0, d1), jnp.float32),
    )

    min_parts, max_parts = pl.pallas_call(
        _iou_sum_kernel,
        out_shape=out_shape,
        grid_spec=pltpu.PrefetchScalarGridSpec(
            num_scalar_prefetch=0,
            grid=(n_split, blocks_per_split),
            in_specs=in_specs,
            out_specs=out_specs,
            scratch_shapes=[
                pltpu.VMEM((d0, d1, tile_hw), jnp.float32),
                pltpu.VMEM((d0, d1, tile_hw), jnp.float32),
            ],
        ),
        compiler_params=pltpu.CompilerParams(
            dimension_semantics=("parallel", "arbitrary"),
            vmem_limit_bytes=_VMEM_LIMIT_BYTES,
        ),
    )(p3, g3)

    return min_parts.sum(axis=0), max_parts.sum(axis=0)


@jax.jit
def _iou_loss_impl(preds, gt):
    N, C, H, W = preds.shape
    hw = H * W
    if gt.shape == preds.shape:
        # Dense layout: (N, C) collapses onto the sublane axis.
        p3 = preds.reshape(1, N * C, hw)
        g3 = gt.reshape(1, N * C, hw)
    else:
        # gt is broadcast against preds (e.g. (N, 1, H, W)): keep it at its
        # native size in HBM, the kernel broadcasts it in VMEM.
        assert gt.ndim == 4 and gt.shape[2:] == (H, W), gt.shape
        assert gt.shape[0] in (1, N) and gt.shape[1] in (1, C), gt.shape
        p3 = preds.reshape(N, C, hw)
        g3 = gt.reshape(gt.shape[0], gt.shape[1], hw)

    min_sum, max_sum = _iou_sums(p3, g3)
    # NOTE: max_sum == 0 (all-zero preds & gt for a channel) yields NaN, which
    # matches the PyTorch reference behavior.
    return 1.0 - jnp.mean(min_sum / max_sum)


def iou_loss(preds, gt):
    """Matches IoU_loss.forward. `preds` may be a list (concat over channel)."""
    if isinstance(preds, (list, tuple)):
        preds = jnp.concatenate(preds, axis=1)
    return _iou_loss_impl(preds, gt)


def _reference(preds, gt):
    if isinstance(preds, (list, tuple)):
        preds = jnp.concatenate(preds, axis=1)
    p = preds.astype(jnp.float32)
    g = jnp.broadcast_to(gt, p.shape).astype(jnp.float32)
    N, C, H, W = p.shape
    mn = jnp.minimum(p, g).reshape(N, C, H * W).sum(axis=2)
    mx = jnp.maximum(p, g).reshape(N, C, H * W).sum(axis=2)
    return 1.0 - jnp.mean(mn / mx)


if __name__ == "__main__":
    key = jax.random.PRNGKey(0)
    k1, k2, k3 = jax.random.split(key, 3)
    N, C, H, W = 2, 4, 16, 16
    # Positive values so min_sum / max_sum is well-behaved (as for masks).
    preds = jax.random.uniform(k1, (N, C, H, W), jnp.float32, 0.05, 1.0)
    gt_full = jax.random.uniform(k2, (N, C, H, W), jnp.float32, 0.05, 1.0)
    gt_bcast = jax.random.uniform(k3, (N, 1, H, W), jnp.float32, 0.05, 1.0)

    # Case 1: gt with full shape (same as preds).
    loss1 = jax.block_until_ready(iou_loss(preds, gt_full))
    ref1 = _reference(preds, gt_full)
    assert jnp.allclose(loss1, ref1, rtol=1e-5, atol=1e-6), (loss1, ref1)

    # Case 2: gt broadcast along channels -- no materialized broadcast in HBM.
    loss2 = jax.block_until_ready(iou_loss(preds, gt_bcast))
    ref2 = _reference(preds, gt_bcast)
    assert jnp.allclose(loss2, ref2, rtol=1e-5, atol=1e-6), (loss2, ref2)

    # Case 3: list-of-preds input (concat over channel dim), as in the module.
    loss3 = jax.block_until_ready(iou_loss([preds[:, :2], preds[:, 2:]], gt_full))
    assert jnp.allclose(loss3, ref1, rtol=1e-5, atol=1e-6), (loss3, ref1)

    print("KERNEL_OK")
</pallas_src>

<mosaic_0001>
module attributes {stable_mosaic.version = 11 : i64} {
  func.func @_iou_sum_kernel(%arg0: i32, %arg1: i32, %arg2: memref<1x8x256xf32, #tpu.memory_space<vmem>>, %arg3: memref<1x8x256xf32, #tpu.memory_space<vmem>>, %arg4: memref<1x1x8xf32, #tpu.memory_space<vmem>>, %arg5: memref<1x1x8xf32, #tpu.memory_space<vmem>>, %arg6: memref<1x8x256xf32, #tpu.memory_space<vmem>>, %arg7: memref<1x8x256xf32, #tpu.memory_space<vmem>>) attributes {dimension_semantics = [#tpu.dimension_semantics<parallel>, #tpu.dimension_semantics<arbitrary>], iteration_bounds = array<i64: 1, 1>, scalar_prefetch = 0 : i64, scratch_operands = 2 : i64, tpu.core_type = #tpu.core_type<tc>, window_params = [{transform_indices = @transform_0, window_bounds = array<i64: 1, 8, 256>}, {transform_indices = @transform_1, window_bounds = array<i64: 1, 8, 256>}, {transform_indices = @transform_2, window_bounds = array<i64: 1, 1, 8>}, {transform_indices = @transform_3, window_bounds = array<i64: 1, 1, 8>}]} {
    %c0_i32 = arith.constant 0 : i32
    %0 = arith.cmpi eq, %arg1, %c0_i32 : i32
    %1 = arith.extui %0 : i1 to i32
    %c0_i32_0 = arith.constant 0 : i32
    %2 = arith.cmpi ne, %1, %c0_i32_0 : i32
    scf.if %2 {
      %cst = arith.constant 0.000000e+00 : f32
      %16 = vector.broadcast %cst : f32 to vector<1x8x256xf32>
      %c0_20 = arith.constant 0 : index
      %c0_21 = arith.constant 0 : index
      %c0_22 = arith.constant 0 : index
      %17 = vector.load %arg6[%c0_20, %c0_21, %c0_22] : memref<1x8x256xf32, #tpu.memory_space<vmem>>, vector<1x8x256xf32>
      tpu.vector_store %arg6[%c0_20, %c0_21, %c0_22], %16 {strides = array<i32>} : memref<1x8x256xf32, #tpu.memory_space<vmem>>, vector<1x8x256xf32>,
      %cst_23 = arith.constant 0.000000e+00 : f32
      %18 = vector.broadcast %cst_23 : f32 to vector<1x8x256xf32>
      %c0_24 = arith.constant 0 : index
      %c0_25 = arith.constant 0 : index
      %c0_26 = arith.constant 0 : index
      %19 = vector.load %arg7[%c0_24, %c0_25, %c0_26] : memref<1x8x256xf32, #tpu.memory_space<vmem>>, vector<1x8x256xf32>
      tpu.vector_store %arg7[%c0_24, %c0_25, %c0_26], %18 {strides = array<i32>} : memref<1x8x256xf32, #tpu.memory_space<vmem>>, vector<1x8x256xf32>,
    } else {
    }
    %c0 = arith.constant 0 : index
    %c0_1 = arith.constant 0 : index
    %c0_2 = arith.constant 0 : index
    %3 = vector.load %arg2[%c0, %c0_1, %c0_2] : memref<1x8x256xf32, #tpu.memory_space<vmem>>, vector<1x8x256xf32>
    %c0_3 = arith.constant 0 : index
    %c0_4 = arith.constant 0 : index
    %c0_5 = arith.constant 0 : index
    %4 = vector.load %arg3[%c0_3, %c0_4, %c0_5] : memref<1x8x256xf32, #tpu.memory_space<vmem>>, vector<1x8x256xf32>
    %c0_6 = arith.constant 0 : index
    %c0_7 = arith.constant 0 : index
    %c0_8 = arith.constant 0 : index
    %5 = vector.load %arg6[%c0_6, %c0_7, %c0_8] : memref<1x8x256xf32, #tpu.memory_space<vmem>>, vector<1x8x256xf32>
    %6 = arith.minimumf %3, %4 : vector<1x8x256xf32>
    %7 = arith.addf %5, %6 : vector<1x8x256xf32>
    %c0_9 = arith.constant 0 : index
    %c0_10 = arith.constant 0 : index
    %c0_11 = arith.constant 0 : index
    %8 = vector.load %arg6[%c0_9, %c0_10, %c0_11] : memref<1x8x256xf32, #tpu.memory_space<vmem>>, vector<1x8x256xf32>
    tpu.vector_store %arg6[%c0_9, %c0_10, %c0_11], %7 {strides = array<i32>} : memref<1x8x256xf32, #tpu.memory_space<vmem>>, vector<1x8x256xf32>,
    %c0_12 = arith.constant 0 : index
    %c0_13 = arith.constant 0 : index
    %c0_14 = arith.constant 0 : index
    %9 = vector.load %arg7[%c0_12, %c0_13, %c0_14] : memref<1x8x256xf32, #tpu.memory_space<vmem>>, vector<1x8x256xf32>
    %10 = arith.maximumf %3, %4 : vector<1x8x256xf32>
    %11 = arith.addf %9, %10 : vector<1x8x256xf32>
    %c0_15 = arith.constant 0 : index
    %c0_16 = arith.constant 0 : index
    %c0_17 = arith.constant 0 : index
    %12 = vector.load %arg7[%c0_15, %c0_16, %c0_17] : memref<1x8x256xf32, #tpu.memory_space<vmem>>, vector<1x8x256xf32>
    tpu.vector_store %arg7[%c0_15, %c0_16, %c0_17], %11 {strides = array<i32>} : memref<1x8x256xf32, #tpu.memory_space<vmem>>, vector<1x8x256xf32>,
    %c0_i32_18 = arith.constant 0 : i32
    %13 = arith.cmpi eq, %arg1, %c0_i32_18 : i32
    %14 = arith.extui %13 : i1 to i32
    %c0_i32_19 = arith.constant 0 : i32
    %15 = arith.cmpi ne, %14, %c0_i32_19 : i32
    scf.if %15 {
      %c0_20 = arith.constant 0 : index
      %c0_21 = arith.constant 0 : index
      %c0_22 = arith.constant 0 : index
      %16 = vector.load %arg6[%c0_20, %c0_21, %c0_22] : memref<1x8x256xf32, #tpu.memory_space<vmem>>, vector<1x8x256xf32>
      %cst = arith.constant dense<0.000000e+00> : vector<1x8xf32>
      %17 = vector.multi_reduction <add>, %16, %cst [2] : vector<1x8x256xf32> to vector<1x8xf32>
      %18 = vector.shape_cast %17 : vector<1x8xf32> to vector<1x1x8xf32>
      %c0_23 = arith.constant 0 : index
      %c0_24 = arith.constant 0 : index
      %c0_25 = arith.constant 0 : index
      %19 = vector.load %arg4[%c0_23, %c0_24, %c0_25] : memref<1x1x8xf32, #tpu.memory_space<vmem>>, vector<1x1x8xf32>
      tpu.vector_store %arg4[%c0_23, %c0_24, %c0_25], %18 {strides = array<i32>} : memref<1x1x8xf32, #tpu.memory_space<vmem>>, vector<1x1x8xf32>,
      %c0_26 = arith.constant 0 : index
      %c0_27 = arith.constant 0 : index
      %c0_28 = arith.constant 0 : index
      %20 = vector.load %arg7[%c0_26, %c0_27, %c0_28] : memref<1x8x256xf32, #tpu.memory_space<vmem>>, vector<1x8x256xf32>
      %cst_29 = arith.constant dense<0.000000e+00> : vector<1x8xf32>
      %21 = vector.multi_reduction <add>, %20, %cst_29 [2] : vector<1x8x256xf32> to vector<1x8xf32>
      %22 = vector.shape_cast %21 : vector<1x8xf32> to vector<1x1x8xf32>
      %c0_30 = arith.constant 0 : index
      %c0_31 = arith.constant 0 : index
      %c0_32 = arith.constant 0 : index
      %23 = vector.load %arg5[%c0_30, %c0_31, %c0_32] : memref<1x1x8xf32, #tpu.memory_space<vmem>>, vector<1x1x8xf32>
      tpu.vector_store %arg5[%c0_30, %c0_31, %c0_32], %22 {strides = array<i32>} : memref<1x1x8xf32, #tpu.memory_space<vmem>>, vector<1x1x8xf32>,
    } else {
    }
    return
  }
  func.func @transform_0(%arg0: i32, %arg1: i32) -> (i32, i32, i32) {
    %c1_i32 = arith.constant 1 : i32
    %0 = arith.muli %arg0, %c1_i32 : i32
    %1 = arith.addi %0, %arg1 : i32
    %c0_i32 = arith.constant 0 : i32
    %c0_i32_0 = arith.constant 0 : i32
    %c0_i32_1 = arith.constant 0 : i32
    return %c0_i32, %c0_i32_0, %1 : i32, i32, i32
  }
  func.func @transform_1(%arg0: i32, %arg1: i32) -> (i32, i32, i32) {
    %c1_i32 = arith.constant 1 : i32
    %0 = arith.muli %arg0, %c1_i32 : i32
    %1 = arith.addi %0, %arg1 : i32
    %c0_i32 = arith.constant 0 : i32
    %c0_i32_0 = arith.constant 0 : i32
    %c0_i32_1 = arith.constant 0 : i32
    return %c0_i32, %c0_i32_0, %1 : i32, i32, i32
  }
  func.func @transform_2(%arg0: i32, %arg1: i32) -> (i32, i32, i32) {
    %c0_i32 = arith.constant 0 : i32
    %c0_i32_0 = arith.constant 0 : i32
    %c0_i32_1 = arith.constant 0 : i32
    return %arg0, %c0_i32, %c0_i32_0 : i32, i32, i32
  }
  func.func @transform_3(%arg0: i32, %arg1: i32) -> (i32, i32, i32) {
    %c0_i32 = arith.constant 0 : i32
    %c0_i32_0 = arith.constant 0 : i32
    %c0_i32_1 = arith.constant 0 : i32
    return %arg0, %c0_i32, %c0_i32_0 : i32, i32, i32
  }
}

</mosaic_0001>

<bundles_post_ra>
// kernel: _iou_loss_impl.1
= control target key start
LH: loop header
LB: loop body
LE: loop exit
PB: predicated region body
PF: predicated region fallthrough
CT: control target
= control target key end

     0   :  { %v94_v10 = vlaneseq  ;;  %vm98_vm0 = vcmask 57344   ;;  %s167_s0 = inlined_call_operand.vmem [shape: f32[1,8,256], index: 0, kind: input, shape index: {}]   ;;  %s168_s1 = inlined_call_operand.vmem [shape: f32[1,8,256], index: 1, kind: input, shape index: {}]   ;;  %s169_s2 = inlined_call_operand.vmem [shape: f32[1,1,8], index: 2, kind: output, shape index: {0}]   ;;  %s170_s3 = inlined_call_operand.vmem [shape: f32[1,1,8], index: 3, kind: output, shape index: {1}]  }
   0x1   :  { %v65_v0 = vld [vmem:[%s167_s0] sm:$0xff]  ;;  %v66_v1 = vld [vmem:[%s167_s0 + $0x8] sm:$0xff] }
   0x2   :  { %v67_v2 = vld [vmem:[%s168_s1] sm:$0xff]  ;;  %v68_v3 = vld [vmem:[%s168_s1 + $0x8] sm:$0xff]  ;;  %v95_v11 = vand.u32 127, %v94_v10 }
   0x3   :  { %v71_v4 = vmin.f32 %v65_v0, %v67_v2  ;;  %v72_v5 = vmin.f32 %v66_v1, %v68_v3  ;;  %v79_v7 = vmax.f32 %v65_v0, %v67_v2  ;;  %v80_v8 = vmax.f32 %v66_v1, %v68_v3 }
   0x5   :  { %v90_v6 = vadd.f32 %v72_v5, %v71_v4  ;;  %v102_v9 = vadd.f32 %v80_v8, %v79_v7 }
   0x7   :  { %91 = vadd.xlane.f32.xlu0 %v90_v6 }
   0xf   :  { %103 = vadd.xlane.f32.xlu0 %v102_v9 }
  0x7a   :  { %v92_v12 = vpop.xlane.xlu0 %91 }
  0x7b   :  { %v96_v13 = vperm.slane %v92_v12, %v95_v11 }
  0x7d   :  { %99 = vst.msk [vmem:[%s169_s2] sm:$0x1] %vm98_vm0, %v96_v13 }
  0x82   :  { %v104_v14 = vpop.xlane.xlu0 %103 }
  0x83   :  { %v106_v15 = vperm.slane %v104_v14, %v95_v11 }
  0x85   :  { %108 = vst.msk [vmem:[%s170_s3] sm:$0x1] %vm98_vm0, %v106_v15 }

</bundles_post_ra>
